<compile_context>
chip_gen: v7x
topology: tpu7x:2x2x1
jax: 0.10.0
libtpu: 0.0.40
codegen_flags: <defaults>
</compile_context>

<pallas_src>
import functools

import jax
import jax.numpy as jnp
from jax.experimental import pallas as pl
from jax.experimental.pallas import tpu as pltpu

CodebookDim = 32
CodebookSize = 8192

IMAGENET_MEAN = jnp.array([0.485, 0.456, 0.406], jnp.float32)
IMAGENET_STD = jnp.array([0.229, 0.224, 0.225], jnp.float32)


# ----------------------- per-generation VMEM budgets ------------------------

def _detect_vmem_capacity_bytes():
    try:
        info = pltpu.get_tpu_info()
    except Exception:
        return 0
    for name in ("vmem_capacity_bytes", "vmem_bytes", "vmem_size_bytes",
                 "vmem_capacity"):
        try:
            v = int(getattr(info, name))
        except (AttributeError, TypeError, ValueError):
            continue
        if v > 0:
            return v
    return 0


_VMEM_CAP = _detect_vmem_capacity_bytes()
if _VMEM_CAP >= 96 * (1 << 20):        # v5e / v6e class: 128 MiB physical VMEM
    VMEM_LIMIT_BYTES = 100 * (1 << 20)
    WEIGHT_RESIDENT_BYTES = 16 * (1 << 20)   # 768x8192 bf16 head stays resident
elif _VMEM_CAP > 0:                    # v7x class: 64 MiB per TensorCore
    VMEM_LIMIT_BYTES = 48 * (1 << 20)
    WEIGHT_RESIDENT_BYTES = 6 * (1 << 20)    # head falls back to weight-stationary
else:                                  # unknown: stay conservative
    VMEM_LIMIT_BYTES = 64 * (1 << 20)
    WEIGHT_RESIDENT_BYTES = 8 * (1 << 20)


# ----------------------------- tiling helper -------------------------------

def _pick_tile(dim, target, quantum):
    """Full dim if it already fits the target, else a quantum-aligned tile.
    Grids use pl.cdiv; kernels are row independent so ragged edges are fine."""
    if dim <= target:
        return dim
    return max(quantum, (target // quantum) * quantum)


# ----------------------------- Pallas kernels -------------------------------

def _fused_mm_kernel(*refs, ln, res, activation, eps):
    """o = act(LN?(x) @ w + b) + residual?   (bf16 operands, f32 accumulate)."""
    idx = 0
    x_ref = refs[idx]; idx += 1
    w_ref = refs[idx]; idx += 1
    b_ref = refs[idx]; idx += 1
    if ln:
        g_ref = refs[idx]; idx += 1
        gb_ref = refs[idx]; idx += 1
    if res:
        r_ref = refs[idx]; idx += 1
    o_ref = refs[idx]

    if ln:
        x = x_ref[...].astype(jnp.float32)
        mu = jnp.mean(x, axis=-1, keepdims=True)
        xc = x - mu
        var = jnp.mean(xc * xc, axis=-1, keepdims=True)
        x = xc * jax.lax.rsqrt(var + eps)
        x = x * g_ref[...].astype(jnp.float32) + gb_ref[...].astype(jnp.float32)
        xm = x.astype(w_ref.dtype)
    else:
        xm = x_ref[...].astype(w_ref.dtype)

    acc = jnp.dot(xm, w_ref[...], preferred_element_type=jnp.float32)
    acc = acc + b_ref[...].astype(jnp.float32)
    if activation == "gelu":
        # TODO(synk): PyTorch nn.GELU default is exact erf; tanh approx keeps EUP path.
        acc = jax.nn.gelu(acc, approximate=True)
    elif activation == "tanh":
        acc = jnp.tanh(acc)
    if res:
        acc = acc + r_ref[...].astype(jnp.float32)
    o_ref[...] = acc.astype(o_ref.dtype)


def matmul_bias_act(x, w, b, *, gamma=None, beta=None, residual=None,
                    activation="none", out_dtype=jnp.bfloat16,
                    tm=256, eps=1e-6):
    """y = act(LN?(x) @ w + b) + residual?.

    If the whole weight fits the residency budget it stays in VMEM and the
    grid is 1-D over M (weight DMA'd once).  Otherwise a weight-stationary
    2-D grid (N slow, M fast) is used so each weight N-tile is DMA'd once
    while M streams."""
    M, K = x.shape
    K2, N = w.shape
    assert K == K2
    tm = _pick_tile(M, tm, 16)     # bf16 packs 2 rows/sublane -> 16-row quantum

    has_ln = gamma is not None
    has_res = residual is not None
    kernel = functools.partial(_fused_mm_kernel, ln=has_ln, res=has_res,
                               activation=activation, eps=eps)

    args = [x, w, b.reshape(1, N)]
    if has_ln:
        args += [gamma.reshape(1, K), beta.reshape(1, K)]
    if has_res:
        args.append(residual)

    wbytes_per_elem = jnp.dtype(w.dtype).itemsize
    weight_bytes = K * N * wbytes_per_elem

    if weight_bytes <= WEIGHT_RESIDENT_BYTES:
        # Fully weight-resident: constant weight block index, 1-D grid over M.
        grid = (pl.cdiv(M, tm),)
        in_specs = [
            pl.BlockSpec((tm, K), lambda i: (i, 0)),
            pl.BlockSpec((K, N), lambda i: (0, 0)),
            pl.BlockSpec((1, N), lambda i: (0, 0)),
        ]
        if has_ln:
            in_specs += [pl.BlockSpec((1, K), lambda i: (0, 0)),
                         pl.BlockSpec((1, K), lambda i: (0, 0))]
        if has_res:
            in_specs.append(pl.BlockSpec((tm, N), lambda i: (i, 0)))
        out_specs = pl.BlockSpec((tm, N), lambda i: (i, 0))
        dims = ("parallel",)
    else:
        # Weight-stationary: N is the slow axis, M the fast (innermost) axis;
        # the weight block index is constant along M so each N-tile is DMA'd once.
        tn = max(128, min(N, (WEIGHT_RESIDENT_BYTES // (K * wbytes_per_elem)
                              // 128) * 128))
        grid = (pl.cdiv(N, tn), pl.cdiv(M, tm))
        in_specs = [
            pl.BlockSpec((tm, K), lambda j, i: (i, 0)),
            pl.BlockSpec((K, tn), lambda j, i: (0, j)),
            pl.BlockSpec((1, tn), lambda j, i: (0, j)),
        ]
        if has_ln:
            in_specs += [pl.BlockSpec((1, K), lambda j, i: (0, 0)),
                         pl.BlockSpec((1, K), lambda j, i: (0, 0))]
        if has_res:
            in_specs.append(pl.BlockSpec((tm, tn), lambda j, i: (i, j)))
        out_specs = pl.BlockSpec((tm, tn), lambda j, i: (i, j))
        dims = ("parallel", "parallel")

    return pl.pallas_call(
        kernel,
        out_shape=jax.ShapeDtypeStruct((M, N), out_dtype),
        grid=grid,
        in_specs=in_specs,
        out_specs=out_specs,
        compiler_params=pltpu.CompilerParams(
            dimension_semantics=dims,
            vmem_limit_bytes=VMEM_LIMIT_BYTES),
    )(*args)


def _attention_kernel(qkv_ref, o_ref, *, num_heads, scale):
    """All heads of one batch element per grid step.  Heads are sliced out of
    the fused (S, 3D) qkv buffer; each head's output is stored directly into
    its lane slice of the token-major (S, D) output (no concat, bounded live
    ranges).  Softmax scale is folded into q; reciprocal runs on the EUP."""
    D = o_ref.shape[2]
    dh = D // num_heads
    qkv = qkv_ref[0]                                    # (S, 3D) bf16
    # TODO(synk): pair heads / add a head grid axis for 128-lane alignment.
    for h in range(num_heads):
        q = qkv[:, h * dh:(h + 1) * dh] * scale
        k = qkv[:, D + h * dh:D + (h + 1) * dh]
        v = qkv[:, 2 * D + h * dh:2 * D + (h + 1) * dh]
        s = jax.lax.dot_general(q, k, (((1,), (1,)), ((), ())),
                                preferred_element_type=jnp.float32)
        m = jnp.max(s, axis=-1, keepdims=True)
        p = jnp.exp(s - m)
        denom = jnp.sum(p, axis=-1, keepdims=True)
        p = p * pl.reciprocal(denom, approx=True)
        out_h = jnp.dot(p.astype(v.dtype), v, preferred_element_type=jnp.float32)
        o_ref[0, :, h * dh:(h + 1) * dh] = out_h.astype(o_ref.dtype)


def multihead_attention(qkv, num_heads):
    """qkv: (B, S, 3D) bf16 -> (B, S, D) bf16, one batch element per grid step."""
    B, S, threeD = qkv.shape
    D = threeD // 3
    scale = (D // num_heads) ** -0.5
    return pl.pallas_call(
        functools.partial(_attention_kernel, num_heads=num_heads, scale=scale),
        out_shape=jax.ShapeDtypeStruct((B, S, D), jnp.bfloat16),
        grid=(B,),
        in_specs=[pl.BlockSpec((1, S, threeD), lambda b: (b, 0, 0))],
        out_specs=pl.BlockSpec((1, S, D), lambda b: (b, 0, 0)),
        compiler_params=pltpu.CompilerParams(
            dimension_semantics=("parallel",),
            vmem_limit_bytes=VMEM_LIMIT_BYTES),
    )(qkv)


def _task2_codebook_kernel(x_ref, w_ref, b_ref, cb_ref, idx_ref, *, chunk):
    """Fused: z = x @ w_task2 + b; L2-normalize z; nearest codebook index.
    The codebook (pre-L2-normalized in the wrapper) is scanned in `chunk`-wide
    slabs with a running (max, argmax) carry so the full (tm, n_code)
    similarity is never materialized."""
    z = jnp.dot(x_ref[...], w_ref[...], preferred_element_type=jnp.float32)
    z = z + b_ref[...].astype(jnp.float32)
    z = z * jax.lax.rsqrt(jnp.sum(z * z, axis=-1, keepdims=True) + 1e-12)
    zb = z.astype(cb_ref.dtype)

    tm = x_ref.shape[0]
    n_code = cb_ref.shape[0]
    iota = jax.lax.broadcasted_iota(jnp.int32, (tm, chunk), 1)
    run_max = jnp.full((tm, 1), -jnp.inf, jnp.float32)
    run_arg = jnp.zeros((tm, 1), jnp.int32)
    for c in range(0, n_code, chunk):
        sim = jax.lax.dot_general(zb, cb_ref[c:c + chunk, :],
                                  (((1,), (1,)), ((), ())),
                                  preferred_element_type=jnp.float32)
        c_max = jnp.max(sim, axis=-1, keepdims=True)
        cand = jnp.where(sim >= c_max, iota, jnp.int32(chunk))
        c_arg = jnp.min(cand, axis=-1, keepdims=True) + c   # first match in chunk
        better = c_max > run_max                              # earlier chunk wins ties
        run_arg = jnp.where(better, c_arg, run_arg)
        run_max = jnp.maximum(run_max, c_max)
    idx_ref[...] = run_arg


def task2_codebook_indices(x, w2, b2, codebook_norm, tm=256, chunk=2048):
    M, D = x.shape
    n_code, cdim = codebook_norm.shape
    tm = _pick_tile(M, tm, 16)
    chunk = min(chunk, n_code)
    assert n_code % chunk == 0
    return pl.pallas_call(
        functools.partial(_task2_codebook_kernel, chunk=chunk),
        out_shape=jax.ShapeDtypeStruct((M, 1), jnp.int32),
        grid=(pl.cdiv(M, tm),),
        in_specs=[
            pl.BlockSpec((tm, D), lambda i: (i, 0)),
            pl.BlockSpec((D, cdim), lambda i: (0, 0)),
            pl.BlockSpec((1, cdim), lambda i: (0, 0)),
            pl.BlockSpec((n_code, cdim), lambda i: (0, 0)),
        ],
        out_specs=pl.BlockSpec((tm, 1), lambda i: (i, 0)),
        compiler_params=pltpu.CompilerParams(
            dimension_semantics=("parallel",),
            vmem_limit_bytes=VMEM_LIMIT_BYTES),
    )(x, w2, b2.reshape(1, cdim), codebook_norm)


# ------------------------------ Model glue ---------------------------------

def extract_patches(img, patch):
    # img: (B, C, H, W) NCHW -> (B, P, C*p*p) with (C, ph, pw) patch ordering.
    B, C, H, W = img.shape
    gh, gw = H // patch, W // patch
    x = img.reshape(B, C, gh, patch, gw, patch)
    x = x.transpose(0, 2, 4, 1, 3, 5)
    return x.reshape(B, gh * gw, C * patch * patch)


def fold_imagenet_norm_into_patch_embed(w_patch, b_patch, in_chans, patch):
    """(x - mean)/std per channel folds into the linear patch projection:
    flatten(norm(x)) @ W + b == flatten(x) @ (s*W) + (t @ W + b)."""
    assert in_chans == IMAGENET_MEAN.shape[0]
    inv_std = 1.0 / IMAGENET_STD
    shift = -IMAGENET_MEAN * inv_std
    pp = patch * patch
    s_flat = jnp.repeat(inv_std, pp)     # (C*p*p,), channel-major flatten order
    t_flat = jnp.repeat(shift, pp)
    w_f32 = w_patch.astype(jnp.float32)
    w_fold = (w_f32 * s_flat[:, None]).astype(w_patch.dtype)
    b_fold = b_patch.astype(jnp.float32) + t_flat @ w_f32
    return w_fold, b_fold


def init_block(key, dim, mlp_ratio=4):
    ks = jax.random.split(key, 4)
    h = dim * mlp_ratio
    f, bf = jnp.float32, jnp.bfloat16
    return dict(
        ln1_g=jnp.ones((dim,), f), ln1_b=jnp.zeros((dim,), f),
        wqkv=(0.02 * jax.random.normal(ks[0], (dim, 3 * dim), f)).astype(bf),
        bqkv=jnp.zeros((3 * dim,), f),
        wproj=(0.02 * jax.random.normal(ks[1], (dim, dim), f)).astype(bf),
        bproj=jnp.zeros((dim,), f),
        ln2_g=jnp.ones((dim,), f), ln2_b=jnp.zeros((dim,), f),
        wfc1=(0.02 * jax.random.normal(ks[2], (dim, h), f)).astype(bf),
        bfc1=jnp.zeros((h,), f),
        wfc2=(0.02 * jax.random.normal(ks[3], (h, dim), f)).astype(bf),
        bfc2=jnp.zeros((dim,), f),
    )


def transformer_block(x, p, num_heads):
    """Pre-LN ViT block; LN + residual fused into the matmul kernels."""
    B, S, D = x.shape
    x2 = x.reshape(B * S, D)

    qkv = matmul_bias_act(x2, p["wqkv"], p["bqkv"],
                          gamma=p["ln1_g"], beta=p["ln1_b"])         # LN1 + QKV
    attn = multihead_attention(qkv.reshape(B, S, 3 * D), num_heads)  # (B,S,D)
    x2 = matmul_bias_act(attn.reshape(B * S, D), p["wproj"], p["bproj"],
                         residual=x2)                                # proj + residual
    h = matmul_bias_act(x2, p["wfc1"], p["bfc1"],
                        gamma=p["ln2_g"], beta=p["ln2_b"],
                        activation="gelu")                           # LN2 + fc1 + gelu
    x2 = matmul_bias_act(h, p["wfc2"], p["bfc2"], residual=x2)       # fc2 + residual
    return x2.reshape(B, S, D)


def init_tokenizer_params(key, *, in_chans, patch, img_size, dim, depth, heads):
    gh = img_size // patch
    n_patches = gh * gh
    ks = jax.random.split(key, depth + 6)
    f, bf = jnp.float32, jnp.bfloat16
    return dict(
        patch=patch, dim=dim, heads=heads, grid=(gh, gh),
        w_patch=(0.02 * jax.random.normal(ks[0], (in_chans * patch * patch, dim), f)).astype(bf),
        b_patch=jnp.zeros((dim,), f),
        cls=(0.02 * jax.random.normal(ks[1], (1, 1, dim), f)).astype(bf),
        pos=(0.02 * jax.random.normal(ks[2], (1, n_patches + 1, dim), f)).astype(bf),
        blocks=[init_block(ks[3 + i], dim) for i in range(depth)],
        lnf_g=jnp.ones((dim,), f), lnf_b=jnp.zeros((dim,), f),
        w_task1=(0.02 * jax.random.normal(ks[3 + depth], (dim, dim), f)).astype(bf),
        b_task1=jnp.zeros((dim,), f),
        w_task2=(0.02 * jax.random.normal(ks[4 + depth], (dim, CodebookDim), f)).astype(bf),
        b_task2=jnp.zeros((CodebookDim,), f),
        codebook=jax.random.normal(ks[5 + depth], (CodebookSize, CodebookDim), f),
    )


def tokenizer_get_codebook_indices(img, p):
    # process_type == 'imagenet_norm': the per-channel affine is folded into
    # the patch-embed weight/bias (no full-image normalization pass).
    B, C = img.shape[0], img.shape[1]
    w_pe, b_pe = fold_imagenet_norm_into_patch_embed(p["w_patch"], p["b_patch"],
                                                     C, p["patch"])
    patches = extract_patches(img, p["patch"]).astype(jnp.bfloat16)  # (B, P, Cpp)
    P = patches.shape[1]
    D = p["dim"]
    tok = matmul_bias_act(patches.reshape(B * P, -1), w_pe, b_pe)
    tok = tok.reshape(B, P, D)
    cls = jnp.broadcast_to(p["cls"], (B, 1, D))
    h = jnp.concatenate([cls, tok], axis=1) + p["pos"]
    for blk in p["blocks"]:
        h = transformer_block(h, blk, p["heads"])
    # Final LN is per-row, so dropping the cls token first is equivalent; the
    # LN itself is fused into the task1 projection below.
    h = h[:, 1:, :].reshape(B * P, D)
    z = matmul_bias_act(h, p["w_task1"], p["b_task1"],
                        gamma=p["lnf_g"], beta=p["lnf_b"], activation="tanh")
    # Codebook L2-normalization hoisted out of the kernel (once per forward).
    cb = p["codebook"]
    cb = (cb * jax.lax.rsqrt(jnp.sum(cb * cb, axis=-1, keepdims=True) + 1e-12)
          ).astype(jnp.bfloat16)
    idx = task2_codebook_indices(z, p["w_task2"], p["b_task2"], cb)  # (B*P, 1)
    return idx.reshape(B, P)


def init_mae_params(key, *, in_chans, patch, img_size, dim, depth, heads, vocab):
    gh = img_size // patch
    n_patches = gh * gh
    ks = jax.random.split(key, depth + 5)
    f, bf = jnp.float32, jnp.bfloat16
    return dict(
        patch=patch, dim=dim, heads=heads,
        w_patch=(0.02 * jax.random.normal(ks[0], (in_chans * patch * patch, dim), f)).astype(bf),
        b_patch=jnp.zeros((dim,), f),
        cls=(0.02 * jax.random.normal(ks[1], (1, 1, dim), f)).astype(bf),
        mask_token=(0.02 * jax.random.normal(ks[2], (1, 1, dim), f)).astype(bf),
        pos=(0.02 * jax.random.normal(ks[3], (1, n_patches + 1, dim), f)).astype(bf),
        blocks=[init_block(ks[4 + i], dim) for i in range(depth)],
        lnf_g=jnp.ones((dim,), f), lnf_b=jnp.zeros((dim,), f),
        w_head=(0.02 * jax.random.normal(ks[4 + depth], (dim, vocab), f)).astype(bf),
        b_head=jnp.zeros((vocab,), f),
    )


def mae_forward(batch, p):
    img = batch["image"]
    mask = batch["bool_masked_pos"]                    # (B, P) bool
    B = img.shape[0]
    patches = extract_patches(img, p["patch"]).astype(jnp.bfloat16)
    P = patches.shape[1]
    D = p["dim"]
    tok = matmul_bias_act(patches.reshape(B * P, -1), p["w_patch"],
                          p["b_patch"]).reshape(B, P, D)
    mask_tok = jnp.broadcast_to(p["mask_token"], (B, P, D))
    tok = jnp.where(mask[:, :, None], mask_tok, tok)
    cls = jnp.broadcast_to(p["cls"], (B, 1, D))
    h = jnp.concatenate([cls, tok], axis=1) + p["pos"]
    for blk in p["blocks"]:
        h = transformer_block(h, blk, p["heads"])
    h = h[:, 1:, :].reshape(B * P, D)                  # drop cls (LN fused below)
    # Final LN fused into the 8192-wide codebook-class head.  On v5e/v6e the
    # full bf16 head weight stays VMEM-resident (1-D grid over M); on 64 MiB
    # parts it switches to a weight-stationary (N slow, M fast) grid.
    logits = matmul_bias_act(h, p["w_head"], p["b_head"],
                             gamma=p["lnf_g"], beta=p["lnf_b"],
                             tm=512, out_dtype=jnp.bfloat16)
    return {"beit_model_output": logits.reshape(B, P, CodebookSize)}


def beit_training_forward(batch, tok_params, mae_params, flip_for_tokenizer=False):
    img_t = batch["image_for_tokenizer"]
    if flip_for_tokenizer:
        img_t = jnp.flip(img_t, axis=2)
    labels = tokenizer_get_codebook_indices(img_t, tok_params)
    if flip_for_tokenizer:
        gh, gw = tok_params["grid"]
        labels = jnp.flip(labels.reshape(-1, gh, gw), axis=1).reshape(labels.shape)
    labels = jax.lax.stop_gradient(labels)   # tokenizer is frozen (torch.no_grad)
    outputs = mae_forward(batch, mae_params)
    assert "beit_model_output" in outputs and "tokenizer_labels" not in outputs
    outputs["tokenizer_labels"] = labels
    return outputs


# --------------------------------- Main -------------------------------------

if __name__ == "__main__":
    key = jax.random.PRNGKey(0)
    k_img, k_mask, k_tok, k_mae = jax.random.split(key, 4)

    B, C, HW, PATCH = 2, 3, 32, 8
    n_patches = (HW // PATCH) ** 2                       # 16 patches

    img = jax.random.uniform(k_img, (B, C, HW, HW), jnp.float32)
    mask = jax.random.bernoulli(k_mask, 0.4, (B, n_patches))
    batch = {"image_for_tokenizer": img, "image": img, "bool_masked_pos": mask}

    tok_params = init_tokenizer_params(k_tok, in_chans=C, patch=PATCH,
                                       img_size=HW, dim=64, depth=2, heads=2)
    mae_params = init_mae_params(k_mae, in_chans=C, patch=PATCH, img_size=HW,
                                 dim=64, depth=2, heads=2, vocab=CodebookSize)

    out = beit_training_forward(batch, tok_params, mae_params,
                                flip_for_tokenizer=False)
    jax.block_until_ready(out)

    assert out["beit_model_output"].shape == (B, n_patches, CodebookSize)
    assert out["beit_model_output"].dtype == jnp.bfloat16
    assert out["tokenizer_labels"].shape == (B, n_patches)
    assert out["tokenizer_labels"].dtype == jnp.int32
    print("KERNEL_OK")
</pallas_src>

<mosaic_0001>
module attributes {stable_mosaic.version = 11 : i64} {
  func.func @_fused_mm_kernel(%arg0: i32, %arg1: memref<32x192xbf16, #tpu.memory_space<vmem>>, %arg2: memref<192x64xbf16, #tpu.memory_space<vmem>>, %arg3: memref<1x64xf32, #tpu.memory_space<vmem>>, %arg4: memref<32x64xbf16, #tpu.memory_space<vmem>>) attributes {dimension_semantics = [#tpu.dimension_semantics<parallel>], iteration_bounds = array<i64: 1>, scalar_prefetch = 0 : i64, scratch_operands = 0 : i64, tpu.core_type = #tpu.core_type<tc>, window_params = [{transform_indices = @transform_0, window_bounds = array<i64: 32, 192>}, {pipeline_mode = #tpu.pipeline_mode<synchronous>, transform_indices = @transform_1, window_bounds = array<i64: 192, 64>}, {pipeline_mode = #tpu.pipeline_mode<synchronous>, transform_indices = @transform_2, window_bounds = array<i64: 1, 64>}, {transform_indices = @transform_3, window_bounds = array<i64: 32, 64>}]} {
    %c0 = arith.constant 0 : index
    %c0_0 = arith.constant 0 : index
    %0 = vector.load %arg1[%c0, %c0_0] : memref<32x192xbf16, #tpu.memory_space<vmem>>, vector<32x192xbf16>
    %c0_1 = arith.constant 0 : index
    %c0_2 = arith.constant 0 : index
    %1 = vector.load %arg2[%c0_1, %c0_2] : memref<192x64xbf16, #tpu.memory_space<vmem>>, vector<192x64xbf16>
    %cst = arith.constant dense<0.000000e+00> : vector<32x64xf32>
    %2 = tpu.matmul %0, %1, %cst {dimension_numbers = #tpu.dot_dimension_numbers<[1], [0], [0], [1], [0, 0, 1, 1], [], []>} : vector<32x192xbf16>, vector<192x64xbf16>, vector<32x64xf32> -> vector<32x64xf32>
    %c0_3 = arith.constant 0 : index
    %c0_4 = arith.constant 0 : index
    %3 = vector.load %arg3[%c0_3, %c0_4] : memref<1x64xf32, #tpu.memory_space<vmem>>, vector<1x64xf32>
    %4 = vector.broadcast %3 : vector<1x64xf32> to vector<32x64xf32>
    %5 = arith.addf %2, %4 : vector<32x64xf32>
    %6 = arith.truncf %5 : vector<32x64xf32> to vector<32x64xbf16>
    %c0_5 = arith.constant 0 : index
    %c0_6 = arith.constant 0 : index
    %7 = vector.load %arg4[%c0_5, %c0_6] : memref<32x64xbf16, #tpu.memory_space<vmem>>, vector<32x64xbf16>
    tpu.vector_store %arg4[%c0_5, %c0_6], %6 {strides = array<i32>} : memref<32x64xbf16, #tpu.memory_space<vmem>>, vector<32x64xbf16>,
    return
  }
  func.func @transform_0(%arg0: i32) -> (i32, i32) {
    %c0_i32 = arith.constant 0 : i32
    %c0_i32_0 = arith.constant 0 : i32
    return %arg0, %c0_i32 : i32, i32
  }
  func.func @transform_1(%arg0: i32) -> (i32, i32) {
    %c0_i32 = arith.constant 0 : i32
    %c0_i32_0 = arith.constant 0 : i32
    %c0_i32_1 = arith.constant 0 : i32
    return %c0_i32, %c0_i32_0 : i32, i32
  }
  func.func @transform_2(%arg0: i32) -> (i32, i32) {
    %c0_i32 = arith.constant 0 : i32
    %c0_i32_0 = arith.constant 0 : i32
    %c0_i32_1 = arith.constant 0 : i32
    return %c0_i32, %c0_i32_0 : i32, i32
  }
  func.func @transform_3(%arg0: i32) -> (i32, i32) {
    %c0_i32 = arith.constant 0 : i32
    %c0_i32_0 = arith.constant 0 : i32
    return %arg0, %c0_i32 : i32, i32
  }
}

</mosaic_0001>

<bundles_post_ra>
// kernel: tpu_custom_call.1
= control target key start
LH: loop header
LB: loop body
LE: loop exit
PB: predicated region body
PF: predicated region fallthrough
CT: control target
= control target key end

     0   :  { %8 = vsyncpa [#allocation3], 0  ;;  %s534_s0 = inlined_call_operand.hbm [shape: bf16[32,192], index: 0, kind: input, shape index: {}]   ;;  %s535_s1 = inlined_call_operand.hbm [shape: bf16[192,64], index: 1, kind: input, shape index: {}]   ;;  %s536_s2 = inlined_call_operand.hbm [shape: f32[1,64], index: 2, kind: input, shape index: {}]   ;;  %s537_s3 = inlined_call_operand.hbm [shape: bf16[32,64], index: 3, kind: output, shape index: {}]  }
   0x1   :  { %9 = vsyncpa [#allocation6], 0 }
   0x2   :  { %10 = vsyncpa [#allocation4], 0  ;;  %s447_s12 = smov [#allocation5]   ;;  %s353_s16 = scalar_lea.hbm %s535_s1, 1536 }
   0x3   :  { %s28_s13 = sshll.u32 %s447_s12, 4  ;;  %p354_p0 = scmp.ne.s32.totalorder %s535_s1, %s353_s16  ;;  %s29_s13 = int_to_ptr.vmem [resolvable:$true] %s28_s13 }
   0x4   :  { %p357_p1 = scmp.lt.u32.totalorder %s353_s16, %s535_s1 }
   0x6   :  { %p359_p2 = pnand %p357_p1, %p354_p0 }
   0x8   :  { %362 = shalt.err (!%p359_p2)
}
   0x9   :  { %s363_s21 = scalar_lea.vmem %s29_s13, 1536  ;;  %p368_p4 = scmp.lt.s32.totalorder %s29_s13, %s29_s13 }
   0xa   :  { %p364_p3 = scmp.ne.s32.totalorder %s29_s13, %s363_s21  ;;  %p369_p5 = scmp.lt.s32.totalorder %s363_s21, %s363_s21 }
   0xc   :  { %p370_p6 = por %p369_p5, %p368_p4 }
   0xe   :  { %p371_p7 = pnand %p370_p6, %p364_p3 }
  0x10   :  { %374 = shalt.err (!%p371_p7)
}
  0x11   :  { %s448_s22 = smov 64   ;;  %s449_s23 = smov 4  }
  0x12   :  { %34 = dma.hbm_to_vmem [thread:$0]  %s535_s1, 1536, %s29_s13, [#allocation6], %s448_s22, %s448_s22, %s449_s23  }
  0x13   :  { %s450_s26 = smov [#allocation2]   ;;  %s375_s30 = scalar_lea.hbm %s534_s0, 512 }
  0x14   :  { %s16_s27 = sshll.u32 %s450_s26, 4  ;;  %p376_p8 = scmp.ne.s32.totalorder %s534_s0, %s375_s30  ;;  %s17_s27 = int_to_ptr.vmem [resolvable:$true] %s16_s27 }
  0x15   :  { %p379_p9 = scmp.lt.u32.totalorder %s375_s30, %s534_s0 }
  0x17   :  { %p381_p10 = pnand %p379_p9, %p376_p8 }
  0x19   :  { %384 = shalt.err (!%p381_p10)
}
  0x1a   :  { %s385_s8 = scalar_lea.vmem %s17_s27, 512  ;;  %p390_p12 = scmp.lt.s32.totalorder %s17_s27, %s17_s27 }
  0x1b   :  { %p386_p11 = scmp.ne.s32.totalorder %s17_s27, %s385_s8  ;;  %p391_p13 = scmp.lt.s32.totalorder %s385_s8, %s385_s8 }
  0x1d   :  { %p392_p0 = por %p391_p13, %p390_p12 }
  0x1f   :  { %p393_p1 = pnand %p392_p0, %p386_p11 }
  0x21   :  { %396 = shalt.err (!%p393_p1)
}
  0x22   :  { %s451_s1 = smov 128   ;;  %s452_s9 = smov 8  }
  0x23   :  { %22 = dma.hbm_to_vmem [thread:$0]  %s534_s0, 512, %s17_s27, [#allocation3], %s451_s1, %s451_s1, %s452_s9  }
  0x24   :  { %s453_s12 = smov [#allocation7]   ;;  %s397_s16 = scalar_lea.hbm %s536_s2, 16 }
  0x25   :  { %s41_s13 = sshll.u32 %s453_s12, 4  ;;  %p398_p2 = scmp.ne.s32.totalorder %s536_s2, %s397_s16  ;;  %s42_s13 = int_to_ptr.vmem [resolvable:$true] %s41_s13 }
  0x26   :  { %p401_p3 = scmp.lt.u32.totalorder %s397_s16, %s536_s2 }
  0x28   :  { %p403_p4 = pnand %p401_p3, %p398_p2 }
  0x2a   :  { %406 = shalt.err (!%p403_p4)
}
  0x2b   :  { %s407_s21 = scalar_lea.vmem %s42_s13, 16  ;;  %s411_s0 = scalar_lea.vmem %s42_s13, 32 }
  0x2c   :  { %p408_p5 = scmp.ne.s32.totalorder %s42_s13, %s407_s21  ;;  %p412_p6 = scmp.lt.s32.totalorder %s42_s13, %s42_s13 }
  0x2d   :  { %p413_p7 = scmp.lt.s32.totalorder %s411_s0, %s407_s21 }
  0x2f   :  { %p414_p8 = por %p413_p7, %p412_p6 }
  0x31   :  { %p415_p9 = pnand %p414_p8, %p408_p5 }
  0x33   :  { %418 = shalt.err (!%p415_p9)
}
  0x34   :  { %44 = dma.hbm_to_vmem [thread:$0]  %s536_s2, 16, %s42_s13, [#allocation6]  }
  0x35   :  { %441 = dma.done.wait [#allocation3], 512  }
  0x36   :  { %442 = vsyncadd [#allocation3], 4294966784 }
  0x37   :  { %443 = dma.done.wait [#allocation6], 1552  }
  0x38   :  { %444 = vsyncadd [#allocation6], 4294965744  ;;  %v454_v0 = vmov 0   ;;  %v335_v1 = vld [vmem:[#allocation5] sm:$0xff]   ;;  %v336_v2 = vld [vmem:[#allocation5 + $0x8] sm:$0xff]   ;;  %vm180_vm0 = vcmask 523264  }
  0x39   :  { %187 = vmatprep.subr.bf16.mxu0 %v454_v0  ;;  %302 = vmatprep.subr.bf16.mxu1 %v454_v0  ;;  %v337_v3 = vld [vmem:[#allocation5 + $0x10] sm:$0xff]   ;;  %v338_v4 = vld [vmem:[#allocation5 + $0x18] sm:$0xff]   ;;  %v349_v5 = vld [vmem:[#allocation2 + $0x4] ss:$8 sps:$4 sm:$0xff]   ;;  %vm252_vm1 = vcmask 519168   ;;  %s455_s2 = smov [#allocation8]  }
  0x3a   :  { %188 = vmatpush1.bf16.msra.mxu0 %v335_v1  ;;  %314 = vmatpush1.bf16.msra.mxu1 %v335_v1  ;;  %v339_v6 = vld [vmem:[#allocation5 + $0x20] sm:$0xff]   ;;  %v352_v7 = vld [vmem:[#allocation2 + $0x14] ss:$8 sps:$4 sm:$0xff]   ;;  %v340_v8 = vld [vmem:[#allocation5 + $0x28] sm:$0xff]   ;;  %s262_s26 = sshll.u32 %s455_s2, 4  ;;  %s263_s26 = int_to_ptr.vmem [resolvable:$true] %s262_s26 }
  0x3b   :  { %189 = vmatprep.subr.bf16.mxu0 %v454_v0  ;;  %303 = vmatprep.subr.bf16.mxu1 %v454_v0  ;;  %v341_v9 = vld [vmem:[#allocation5 + $0x30] sm:$0xff]   ;;  %v342_v10 = vld [vmem:[#allocation5 + $0x38] sm:$0xff]   ;;  %v343_v11 = vld [vmem:[#allocation5 + $0x40] sm:$0xff]   ;;  %s419_s27 = scalar_lea.vmem %s263_s26, 256  ;;  %p424_p11 = scmp.lt.s32.totalorder %s263_s26, %s263_s26 }
  0x3c   :  { %292 = vmatprep.mubr.msk.bf16.mxu0 %vm180_vm0, %v349_v5  ;;  %293 = vmatprep.mubr.msk.bf16.mxu1 %vm180_vm0, %v352_v7  ;;  %v344_v12 = vld [vmem:[#allocation5 + $0x48] sm:$0xff]   ;;  %v345_v13 = vld [vmem:[#allocation5 + $0x50] sm:$0xff]   ;;  %v346_v14 = vld [vmem:[#allocation5 + $0x58] sm:$0xff]   ;;  %p420_p10 = scmp.ne.s32.totalorder %s263_s26, %s419_s27  ;;  %p425_p12 = scmp.lt.s32.totalorder %s419_s27, %s419_s27 }
  0x3d   :  { %v347_v15 = vld [vmem:[#allocation2] ss:$8 sps:$4 sm:$0xff]   ;;  %v350_v16 = vld [vmem:[#allocation2 + $0x10] ss:$8 sps:$4 sm:$0xff]  }
  0x3e   :  { %190 = vmatpush1.bf16.msra.mxu0 %v336_v2  ;;  %315 = vmatpush1.bf16.msra.mxu1 %v336_v2  ;;  %v275_v17 = vld [vmem:[#allocation7] ss:$0 sm:$0xff]  ;;  %p426_p13 = por %p425_p12, %p424_p11 }
  0x3f   :  { %191 = vmatprep.subr.bf16.mxu0 %v454_v0  ;;  %304 = vmatprep.subr.bf16.mxu1 %v454_v0 }
  0x40   :  { %p427_p0 = pnand %p426_p13, %p420_p10 }
  0x42   :  { %192 = vmatpush1.bf16.msra.mxu0 %v337_v3  ;;  %316 = vmatpush1.bf16.msra.mxu1 %v337_v3 }
  0x43   :  { %193 = vmatprep.subr.bf16.mxu0 %v454_v0  ;;  %305 = vmatprep.subr.bf16.mxu1 %v454_v0 }
  0x46   :  { %194 = vmatpush1.bf16.msra.mxu0 %v338_v4  ;;  %317 = vmatpush1.bf16.msra.mxu1 %v338_v4 }
  0x47   :  { %195 = vmatprep.subr.bf16.mxu0 %v454_v0  ;;  %306 = vmatprep.subr.bf16.mxu1 %v454_v0 }
  0x4a   :  { %196 = vmatpush1.bf16.msra.mxu0 %v339_v6  ;;  %318 = vmatpush1.bf16.msra.mxu1 %v339_v6 }
  0x4b   :  { %197 = vmatprep.subr.bf16.mxu0 %v454_v0  ;;  %307 = vmatprep.subr.bf16.mxu1 %v454_v0 }
  0x4e   :  { %198 = vmatpush1.bf16.msra.mxu0 %v340_v8  ;;  %319 = vmatpush1.bf16.msra.mxu1 %v340_v8 }
  0x4f   :  { %199 = vmatprep.subr.bf16.mxu0 %v454_v0  ;;  %308 = vmatprep.subr.bf16.mxu1 %v454_v0 }
  0x52   :  { %200 = vmatpush1.bf16.msra.mxu0 %v341_v9  ;;  %320 = vmatpush1.bf16.msra.mxu1 %v341_v9 }
  0x53   :  { %201 = vmatprep.subr.bf16.mxu0 %v454_v0  ;;  %309 = vmatprep.subr.bf16.mxu1 %v454_v0 }
  0x56   :  { %202 = vmatpush1.bf16.msra.mxu0 %v342_v10  ;;  %321 = vmatpush1.bf16.msra.mxu1 %v342_v10 }
  0x57   :  { %203 = vmatprep.subr.bf16.mxu0 %v454_v0  ;;  %310 = vmatprep.subr.bf16.mxu1 %v454_v0 }
  0x5a   :  { %204 = vmatpush1.bf16.msra.mxu0 %v343_v11  ;;  %322 = vmatpush1.bf16.msra.mxu1 %v343_v11 }
  0x5b   :  { %205 = vmatprep.subr.bf16.mxu0 %v454_v0  ;;  %311 = vmatprep.subr.bf16.mxu1 %v454_v0 }
  0x5e   :  { %206 = vmatpush1.bf16.msra.mxu0 %v344_v12  ;;  %323 = vmatpush1.bf16.msra.mxu1 %v344_v12 }
  0x5f   :  { %207 = vmatprep.subr.bf16.mxu0 %v454_v0  ;;  %312 = vmatprep.subr.bf16.mxu1 %v454_v0 }
  0x62   :  { %208 = vmatpush1.bf16.msra.mxu0 %v345_v13  ;;  %324 = vmatpush1.bf16.msra.mxu1 %v345_v13 }
  0x63   :  { %209 = vmatprep.subr.bf16.mxu0 %v454_v0  ;;  %313 = vmatprep.subr.bf16.mxu1 %v454_v0 }
  0x66   :  { %210 = vmatpush1.bf16.msra.mxu0 %v346_v14  ;;  %325 = vmatpush1.bf16.msra.mxu1 %v346_v14 }
  0x69   :  { %220 = vmatmul.mubr.bf16.vlgmr.msra.gmra.mrb[0].mxu0 %v347_v15  ;;  %228 = vmatmul.mubr.bf16.vlgmr.msra.gmra.mrb[0].mxu1 %v350_v16 }
 0x13c   :  { %v221_v18 = vpop.f32.mrb[0].mxu0  ;;  %v229_v19 = vpop.f32.mrb[0].mxu1 }
 0x13d   :  { %v222_v20 = vadd.f32 %v275_v17, %v221_v18  ;;  %v230_v21 = vadd.f32 %v275_v17, %v229_v19  ;;  %v223_v22 = vpop.f32.mrb[1].mxu0  ;;  %v231_v23 = vpop.f32.mrb[1].mxu1 }
 0x13e   :  { %v224_v24 = vpop.f32.mrb[2].mxu0  ;;  %v232_v25 = vpop.f32.mrb[2].mxu1 }
 0x13f   :  { %v298_v26 = vpack.c.bf16 %v222_v20, %v222_v20  ;;  %v300_v27 = vpack.c.bf16 %v230_v21, %v230_v21  ;;  %v225_v28 = vadd.f32 %v275_v17, %v224_v24  ;;  %v233_v29 = vadd.f32 %v275_v17, %v232_v25  ;;  %v226_v30 = vpop.f32.mrb[3].mxu0  ;;  %v234_v31 = vpop.f32.mrb[3].mxu1 }
 0x141   :  { %253 = vst.msk [vmem:[#allocation8] sm:$0xf] %vm252_vm1, %v298_v26  ;;  %255 = vst.msk [vmem:[#allocation8 + $0x8] sm:$0xf] %vm252_vm1, %v300_v27  ;;  %v299_v32 = vpack.c.bf16 %v225_v28, %v225_v28  ;;  %v301_v33 = vpack.c.bf16 %v233_v29, %v233_v29 }
 0x143   :  { %254 = vst.msk [vmem:[#allocation8 + $0x4] sm:$0xf] %vm252_vm1, %v299_v32  ;;  %256 = vst.msk [vmem:[#allocation8 + $0xc] sm:$0xf] %vm252_vm1, %v301_v33 }
 0x144   :  { %430 = shalt.err (!%p427_p0)
}
 0x145   :  { %s431_s30 = scalar_lea.hbm %s537_s3, 256 }
 0x146   :  { %p432_p1 = scmp.ne.s32.totalorder %s537_s3, %s431_s30  ;;  %p435_p2 = scmp.lt.u32.totalorder %s431_s30, %s537_s3 }
 0x148   :  { %p437_p3 = pnand %p435_p2, %p432_p1 }
 0x14a   :  { %440 = shalt.err (!%p437_p3)
}
 0x14b   :  { %268 = dma.vmem_to_hbm [thread:$0]  %s263_s26, 256, %s537_s3, [#allocation4], %s448_s22, %s448_s22, %s449_s23  }
 0x14c   :  { %445 = dma.done.wait [#allocation4], 256  }
 0x14d   :  { %446 = vsyncadd [#allocation4], 4294967040 }
 0x14e   :  { %272 = vsyncpa [#allocation3], 1 }
 0x14f   :  { %273 = vsyncpa [#allocation6], 1 }
 0x150   :  { %274 = vsyncpa [#allocation4], 1 }

</bundles_post_ra>
